<compile_context>
chip_gen: v7x
topology: tpu7x:2x2x1
jax: 0.10.0
libtpu: 0.0.40
codegen_flags: <defaults>
</compile_context>

<pallas_src>
import functools

import jax
import jax.numpy as jnp
from jax import lax
from jax.experimental import pallas as pl
from jax.experimental.pallas import tpu as pltpu

LN_EPS = 1e-5  # PyTorch nn.LayerNorm default


# ---------------------------------------------------------------- small helpers

def _round_up(x, m):
    return ((x + m - 1) // m) * m


def _pick_tile(n, candidates=(512, 256, 128, 64, 32, 16, 8)):
    """Largest candidate tile that divides n, else the full dimension."""
    for c in candidates:
        if n % c == 0:
            return c
    return n


def _vmem_budget_bytes():
    """Conservative VMEM budget that transfers across v5e/v6e (128 MiB) and v7x (64 MiB)."""
    try:
        cap = int(pltpu.get_tpu_info().vmem_capacity_bytes)
    except Exception:
        cap = 64 * 1024 * 1024
    return max(16 * 1024 * 1024, (cap * 3) // 5)


def _ffn_row_tile(M, Ep, Hp, budget_bytes):
    """Largest row tile whose footprint (double-buffered tiles + resident weights +
    f32 intermediates) fits the per-chip VMEM budget."""
    for tm in (2048, 1024, 512, 256, 128, 64, 32, 16, 8):
        if M % tm:
            continue
        est = (2 * 2 * tm * Ep * 2                  # x / out bf16 tiles, double-buffered
               + 2 * 2 * (Ep * Hp + Hp * Ep)        # w1 / w2 bf16, double-buffered
               + 2 * 4 * (8 * Ep + Hp)              # packed vectors + b1 (f32)
               + 4 * tm * Hp + 3 * 4 * tm * Ep)     # f32 intermediates (hidden + LN/residual)
        if est <= budget_bytes:
            return tm
    return _pick_tile(M)


def _layernorm_padded(x, g, b, n_real):
    """LayerNorm over the REAL feature width n_real.  Padded columns of x are zero and
    the pad entries of g/b are zero, so padded columns stay exactly zero afterwards."""
    inv_n = 1.0 / float(n_real)
    mean = jnp.sum(x, axis=-1, keepdims=True) * inv_n
    var = jnp.sum(x * x, axis=-1, keepdims=True) * inv_n - mean * mean
    var = jnp.maximum(var, 0.0)
    return (x - mean) * lax.rsqrt(var + LN_EPS) * g + b


def _gelu_exact(x):
    # TODO(synk): direct erf lowering in Mosaic is version-dependent; the A&S 7.1.26
    # polynomial (|err| < 1.5e-7) stands in for PyTorch's exact-erf GELU.  On v5e, if the
    # FFN becomes VALU-bound, swap for the tanh-approx GELU (1 EUP tanh + ~5 VPU ops).
    ax = jnp.abs(x) * 0.7071067811865476
    t = 1.0 / (1.0 + 0.3275911 * ax)
    poly = t * (0.254829592 + t * (-0.284496736 + t * (1.421413741
             + t * (-1.453152027 + t * 1.061405429))))
    erf_ax = 1.0 - poly * jnp.exp(-ax * ax)
    erf = jnp.where(x >= 0.0, erf_ax, -erf_ax)
    return 0.5 * x * (1.0 + erf)


# ---------------------------------------------------------------- Pallas kernels

def _attn_block_kernel(x_ref, vec_ref, wqkv_ref, bqkv_ref, wo_ref, o_ref,
                       *, num_heads, dhp, e_real):
    """LN -> fused QKV -> head-batched SDPA -> single out-proj -> +residual -> encoder LN.

    vec_ref rows: 0 attn_ln_g, 1 attn_ln_b, 2 enc_ln_g, 3 enc_ln_b, 4 out-proj bias.
    The 1/sqrt(head_dim) scale is pre-folded into the Q columns of wqkv/bqkv.
    """
    x = x_ref[...].astype(jnp.float32)                                  # [S, Ep]
    vecs = vec_ref[...]
    g_a, b_a = vecs[0:1], vecs[1:2]
    g_e, b_e = vecs[2:3], vecs[3:4]
    bo = vecs[4:5]

    xn = _layernorm_padded(x, g_a, b_a, e_real)
    qkv = (jnp.dot(xn.astype(jnp.bfloat16), wqkv_ref[...],
                   preferred_element_type=jnp.float32) + bqkv_ref[...]
           ).astype(jnp.bfloat16)                                       # [S, 3*H*Dhp], one cast

    hdp = num_heads * dhp
    # Lane-aligned per-head slices (dhp is a multiple of 128) stacked to [H, S, Dhp].
    q = jnp.stack([qkv[:, h * dhp:(h + 1) * dhp] for h in range(num_heads)], axis=0)
    k = jnp.stack([qkv[:, hdp + h * dhp: hdp + (h + 1) * dhp] for h in range(num_heads)], axis=0)
    v = jnp.stack([qkv[:, 2 * hdp + h * dhp: 2 * hdp + (h + 1) * dhp]
                   for h in range(num_heads)], axis=0)

    # Head-batched scores / attention (one MXU dot_general each, batched over heads).
    dots = jnp.einsum('hqd,hkd->hqk', q, k,
                      preferred_element_type=jnp.float32)               # [H, S, S]
    m = jnp.max(dots, axis=-1, keepdims=True)
    e = jnp.exp(dots - m)
    p = e / jnp.sum(e, axis=-1, keepdims=True)                          # exact softmax
    ctx = jnp.einsum('hqk,hkd->hqd', p.astype(jnp.bfloat16), v,
                     preferred_element_type=jnp.float32)                # [H, S, Dhp]

    # Merge heads along lanes and do ONE [S,HD] x [HD,E] out-projection matmul.
    merged = jnp.concatenate([ctx[h] for h in range(num_heads)], axis=-1)  # [S, H*Dhp]
    y = jnp.dot(merged.astype(jnp.bfloat16), wo_ref[...],
                preferred_element_type=jnp.float32) + bo + x            # out-proj + residual
    o_ref[...] = _layernorm_padded(y, g_e, b_e, e_real).astype(o_ref.dtype)


def _ffn_block_kernel(x_ref, vec_ref, w1_ref, b1_ref, w2_ref, o_ref, *, e_real):
    """LN -> W1+bias -> GELU -> W2+bias -> +residual -> encoder LN.

    vec_ref rows: 0 ff_ln_g, 1 ff_ln_b, 2 enc_ln_g, 3 enc_ln_b, 4 b2.
    """
    x = x_ref[...].astype(jnp.float32)                                  # [tm, Ep]
    vecs = vec_ref[...]
    g_f, b_f = vecs[0:1], vecs[1:2]
    g_e, b_e = vecs[2:3], vecs[3:4]
    b2 = vecs[4:5]

    xn = _layernorm_padded(x, g_f, b_f, e_real)
    a = jnp.dot(xn.astype(jnp.bfloat16), w1_ref[...],
                preferred_element_type=jnp.float32) + b1_ref[...]       # [tm, Hp]
    a = _gelu_exact(a)
    y = jnp.dot(a.astype(jnp.bfloat16), w2_ref[...],
                preferred_element_type=jnp.float32) + b2 + x            # [tm, Ep] + residual
    o_ref[...] = _layernorm_padded(y, g_e, b_e, e_real).astype(o_ref.dtype)


def _matmul_bias_kernel(x_ref, w_ref, b_ref, o_ref, acc_ref):
    """Tiled matmul + bias with K-reduction grid axis and f32 accumulator."""
    @pl.when(pl.program_id(2) == 0)
    def _():
        acc_ref[...] = jnp.zeros_like(acc_ref)

    acc_ref[...] += jnp.dot(x_ref[...], w_ref[...],
                            preferred_element_type=jnp.float32)

    @pl.when(pl.program_id(2) == pl.num_programs(2) - 1)
    def _():
        o_ref[...] = (acc_ref[...] + b_ref[...]).astype(o_ref.dtype)


# ---------------------------------------------------------------- wrappers

def attention_block(x2, layer, *, batch, seq, num_heads, dhp, e_real, vmem_limit):
    M, Ep = x2.shape
    hdp = num_heads * dhp
    kern = functools.partial(_attn_block_kernel, num_heads=num_heads, dhp=dhp, e_real=e_real)
    row_spec = pl.BlockSpec((seq, Ep), lambda b: (b, 0))
    inv = lambda r, c: pl.BlockSpec((r, c), lambda b: (0, 0))   # grid-invariant weights
    return pl.pallas_call(
        kern,
        grid=(batch,),
        in_specs=[row_spec,
                  inv(8, Ep),                 # packed LN gammas/betas + out-proj bias
                  inv(Ep, 3 * hdp),           # fused QKV weight (Q pre-scaled)
                  inv(1, 3 * hdp),            # fused QKV bias
                  inv(hdp, Ep)],              # out-projection weight
        out_specs=row_spec,
        out_shape=jax.ShapeDtypeStruct((M, Ep), x2.dtype),
        compiler_params=pltpu.CompilerParams(dimension_semantics=("parallel",),
                                             vmem_limit_bytes=int(vmem_limit)),
    )(x2, layer["attn_vecs"], layer["wqkv"], layer["bqkv"], layer["wo"])


def ffn_block(x2, layer, *, tm, e_real, vmem_limit):
    M, Ep = x2.shape
    Hp = layer["w1"].shape[1]
    row_spec = pl.BlockSpec((tm, Ep), lambda i: (i, 0))
    inv = lambda r, c: pl.BlockSpec((r, c), lambda i: (0, 0))
    return pl.pallas_call(
        functools.partial(_ffn_block_kernel, e_real=e_real),
        grid=(M // tm,),
        in_specs=[row_spec,
                  inv(8, Ep),                 # packed LN gammas/betas + b2
                  inv(Ep, Hp), inv(1, Hp), inv(Hp, Ep)],
        out_specs=row_spec,
        out_shape=jax.ShapeDtypeStruct((M, Ep), x2.dtype),
        compiler_params=pltpu.CompilerParams(dimension_semantics=("parallel",),
                                             vmem_limit_bytes=int(vmem_limit)),
    )(x2, layer["ffn_vecs"], layer["w1"], layer["b1"], layer["w2"])


def linear_tiled(x2, w, b, *, vmem_limit, out_dtype=jnp.float32):
    # x2: [M, K] bf16, w: [K, N] bf16 (N a multiple of 128), b: [1, N] f32
    M, K = x2.shape
    N = w.shape[1]
    tm = _pick_tile(M)
    tn = _pick_tile(N, (512, 256, 128))
    tk = _pick_tile(K, (512, 256, 128))
    return pl.pallas_call(
        _matmul_bias_kernel,
        grid=(M // tm, N // tn, K // tk),
        in_specs=[pl.BlockSpec((tm, tk), lambda i, j, k: (i, k)),
                  pl.BlockSpec((tk, tn), lambda i, j, k: (k, j)),
                  pl.BlockSpec((1, tn), lambda i, j, k: (0, j))],
        out_specs=pl.BlockSpec((tm, tn), lambda i, j, k: (i, j)),
        out_shape=jax.ShapeDtypeStruct((M, N), out_dtype),
        scratch_shapes=[pltpu.VMEM((tm, tn), jnp.float32)],
        compiler_params=pltpu.CompilerParams(
            dimension_semantics=("parallel", "parallel", "arbitrary"),
            vmem_limit_bytes=int(vmem_limit)),
    )(x2, w, b)


# ---------------------------------------------------------------- model (JAX glue)

def make_pos_embed(max_len, E):
    k = jnp.arange(max_len, dtype=jnp.float32)[:, None]
    i = jnp.arange(E // 2, dtype=jnp.float32)[None, :]
    denom = jnp.power(10000.0, 2.0 * i / E)
    ang = k / denom
    pe = jnp.zeros((max_len, E), jnp.float32)
    pe = pe.at[:, 0::2].set(jnp.sin(ang))
    pe = pe.at[:, 1::2].set(jnp.cos(ang))
    return pe[None]                                           # [1, max_len, E]


def init_params(key, vocab, max_len, E, depth, hidden, head_dim, num_heads):
    """Build weights already zero-padded to lane-dense (multiples of 128) shapes.

    Padded rows/columns of every weight, bias, gamma and beta are zero, so the padded
    model computes exactly the unpadded forward pass in the real columns.
    """
    Ep = _round_up(E, 128)
    Hp = _round_up(hidden, 128)
    Dhp = _round_up(head_dim, 128)          # per-head width padded to a full lane block
    HDp = num_heads * Dhp
    Np = _round_up(vocab, 128)
    HD = num_heads * head_dim
    scale = float(head_dim) ** -0.5

    keys = iter(jax.random.split(key, 12 * depth + 8))

    def nrm(shape, s=0.02):
        return (s * jax.random.normal(next(keys), shape)).astype(jnp.float32)

    def pad_to(a, rows, cols):
        out = jnp.zeros((rows, cols), jnp.float32)
        return out.at[:a.shape[0], :a.shape[1]].set(a)

    emb = pad_to(nrm((vocab, E), 1.0), vocab, Ep)
    pos = jnp.zeros((1, max_len, Ep), jnp.float32).at[:, :, :E].set(make_pos_embed(max_len, E))

    enc_g = pad_to(jnp.ones((1, E), jnp.float32), 1, Ep)
    enc_b = jnp.zeros((1, Ep), jnp.float32)

    fc_w = pad_to(nrm((E, vocab)), Ep, Np).astype(jnp.bfloat16)
    fc_b = pad_to(nrm((1, vocab)), 1, Np)

    zero_row = jnp.zeros((1, Ep), jnp.float32)
    layers = []
    for _ in range(depth):
        attn_g = pad_to(jnp.ones((1, E), jnp.float32), 1, Ep)
        attn_b = jnp.zeros((1, Ep), jnp.float32)

        wq, wk, wv = nrm((E, HD)), nrm((E, HD)), nrm((E, HD))
        bq, bk, bv = nrm((1, HD)), nrm((1, HD)), nrm((1, HD))
        wq, bq = wq * scale, bq * scale      # fold 1/sqrt(head_dim) into the Q projection

        wqkv = jnp.zeros((Ep, 3 * HDp), jnp.float32)
        bqkv = jnp.zeros((1, 3 * HDp), jnp.float32)
        for s, (w, b) in enumerate(((wq, bq), (wk, bk), (wv, bv))):
            for h in range(num_heads):
                col = s * HDp + h * Dhp
                wqkv = wqkv.at[:E, col:col + head_dim].set(w[:, h * head_dim:(h + 1) * head_dim])
                bqkv = bqkv.at[:, col:col + head_dim].set(b[:, h * head_dim:(h + 1) * head_dim])

        wo_r = nrm((HD, E))
        bo = pad_to(nrm((1, E)), 1, Ep)
        wo = jnp.zeros((HDp, Ep), jnp.float32)
        for h in range(num_heads):
            wo = wo.at[h * Dhp:h * Dhp + head_dim, :E].set(wo_r[h * head_dim:(h + 1) * head_dim, :])

        ff_g = pad_to(jnp.ones((1, E), jnp.float32), 1, Ep)
        ff_b = jnp.zeros((1, Ep), jnp.float32)
        w1 = pad_to(nrm((E, hidden)), Ep, Hp)
        b1 = pad_to(nrm((1, hidden)), 1, Hp)
        w2 = pad_to(nrm((hidden, E)), Hp, Ep)
        b2 = pad_to(nrm((1, E)), 1, Ep)

        # Packed per-kernel small vectors -> single [8, Ep] DMA each (rows 5-7 unused).
        attn_vecs = jnp.concatenate([attn_g, attn_b, enc_g, enc_b, bo,
                                     zero_row, zero_row, zero_row], axis=0)
        ffn_vecs = jnp.concatenate([ff_g, ff_b, enc_g, enc_b, b2,
                                    zero_row, zero_row, zero_row], axis=0)

        layers.append(dict(
            attn_vecs=attn_vecs,
            wqkv=wqkv.astype(jnp.bfloat16), bqkv=bqkv,
            wo=wo.astype(jnp.bfloat16),
            ffn_vecs=ffn_vecs,
            w1=w1.astype(jnp.bfloat16), b1=b1, w2=w2.astype(jnp.bfloat16),
        ))

    # NOTE: cls_token exists in the reference module but is unused in its forward.
    return {"embedding": emb, "pos_embed": pos, "fc_w": fc_w, "fc_b": fc_b, "layers": layers}


def transformer_forward(params, tokens, *, embed_dim, num_heads, head_dim):
    B, S = tokens.shape
    Ep = params["embedding"].shape[1]
    dhp = _round_up(head_dim, 128)

    # embedding lookup (gather) + positional embedding -- plain JAX glue
    x = jnp.take(params["embedding"], tokens, axis=0)           # [B, S, Ep]
    x = x + params["pos_embed"][:, :S]                          # sliced: robust to S <= max_len
    x2 = x.reshape(B * S, Ep).astype(jnp.bfloat16)              # bf16 residual slab

    budget = _vmem_budget_bytes()
    tm = _ffn_row_tile(B * S, Ep, params["layers"][0]["w1"].shape[1], budget)

    # Encoder.forward: x = norm(attn(x,x,x) + x); x = norm(ff(x) + x)  (shared norm).
    for L in params["layers"]:
        x2 = attention_block(x2, L, batch=B, seq=S, num_heads=num_heads,
                             dhp=dhp, e_real=embed_dim, vmem_limit=budget)
        x2 = ffn_block(x2, L, tm=tm, e_real=embed_dim, vmem_limit=budget)

    logits = linear_tiled(x2, params["fc_w"], params["fc_b"], vmem_limit=budget)
    vocab = params["embedding"].shape[0]
    return logits[:, :vocab].reshape(B, S, vocab)


# ---------------------------------------------------------------- driver

if __name__ == "__main__":
    vocab_size, max_len_seq, embedding_dim, enc_depth = 50, 8, 32, 2
    hidden_dim, head_dim, num_heads = 64, 8, 2
    batch = 2

    key = jax.random.PRNGKey(0)
    kp, kt = jax.random.split(key)
    params = init_params(kp, vocab_size, max_len_seq, embedding_dim,
                         enc_depth, hidden_dim, head_dim, num_heads)
    tokens = jax.random.randint(kt, (batch, max_len_seq), 0, vocab_size, dtype=jnp.int32)

    out = transformer_forward(params, tokens, embed_dim=embedding_dim,
                              num_heads=num_heads, head_dim=head_dim)
    out = jax.block_until_ready(out)
    assert out.shape == (batch, max_len_seq, vocab_size), out.shape
    assert jnp.all(jnp.isfinite(out))
    print("KERNEL_OK")
</pallas_src>

<mosaic_0001>
module attributes {stable_mosaic.version = 11 : i64} {
  func.func @_attn_block_kernel(%arg0: i32, %arg1: memref<8x128xbf16, #tpu.memory_space<vmem>>, %arg2: memref<8x128xf32, #tpu.memory_space<vmem>>, %arg3: memref<128x768xbf16, #tpu.memory_space<vmem>>, %arg4: memref<1x768xf32, #tpu.memory_space<vmem>>, %arg5: memref<256x128xbf16, #tpu.memory_space<vmem>>, %arg6: memref<8x128xbf16, #tpu.memory_space<vmem>>) attributes {dimension_semantics = [#tpu.dimension_semantics<parallel>], iteration_bounds = array<i64: 2>, scalar_prefetch = 0 : i64, scratch_operands = 0 : i64, tpu.core_type = #tpu.core_type<tc>, window_params = [{transform_indices = @transform_0, window_bounds = array<i64: 8, 128>}, {pipeline_mode = #tpu.pipeline_mode<synchronous>, transform_indices = @transform_1, window_bounds = array<i64: 8, 128>}, {pipeline_mode = #tpu.pipeline_mode<synchronous>, transform_indices = @transform_2, window_bounds = array<i64: 128, 768>}, {pipeline_mode = #tpu.pipeline_mode<synchronous>, transform_indices = @transform_3, window_bounds = array<i64: 1, 768>}, {pipeline_mode = #tpu.pipeline_mode<synchronous>, transform_indices = @transform_4, window_bounds = array<i64: 256, 128>}, {transform_indices = @transform_5, window_bounds = array<i64: 8, 128>}]} {
    %c0 = arith.constant 0 : index
    %c0_0 = arith.constant 0 : index
    %0 = vector.load %arg1[%c0, %c0_0] : memref<8x128xbf16, #tpu.memory_space<vmem>>, vector<8x128xbf16>
    %1 = arith.extf %0 : vector<8x128xbf16> to vector<8x128xf32>
    %c0_1 = arith.constant 0 : index
    %c0_2 = arith.constant 0 : index
    %2 = vector.load %arg2[%c0_1, %c0_2] : memref<8x128xf32, #tpu.memory_space<vmem>>, vector<8x128xf32>
    %3 = vector.extract_strided_slice %2 {offsets = [0, 0], sizes = [1, 128], strides = [1, 1]} : vector<8x128xf32> to vector<1x128xf32>
    %4 = vector.extract_strided_slice %2 {offsets = [1, 0], sizes = [1, 128], strides = [1, 1]} : vector<8x128xf32> to vector<1x128xf32>
    %5 = vector.extract_strided_slice %2 {offsets = [2, 0], sizes = [1, 128], strides = [1, 1]} : vector<8x128xf32> to vector<1x128xf32>
    %6 = vector.extract_strided_slice %2 {offsets = [3, 0], sizes = [1, 128], strides = [1, 1]} : vector<8x128xf32> to vector<1x128xf32>
    %7 = vector.extract_strided_slice %2 {offsets = [4, 0], sizes = [1, 128], strides = [1, 1]} : vector<8x128xf32> to vector<1x128xf32>
    %cst = arith.constant dense<0.000000e+00> : vector<8xf32>
    %8 = vector.multi_reduction <add>, %1, %cst [1] : vector<8x128xf32> to vector<8xf32>
    %9 = vector.shape_cast %8 : vector<8xf32> to vector<8x1xf32>
    %cst_3 = arith.constant 3.125000e-02 : f32
    %10 = vector.broadcast %cst_3 : f32 to vector<8x1xf32>
    %11 = arith.mulf %9, %10 : vector<8x1xf32>
    %12 = arith.mulf %1, %1 : vector<8x128xf32>
    %cst_4 = arith.constant dense<0.000000e+00> : vector<8xf32>
    %13 = vector.multi_reduction <add>, %12, %cst_4 [1] : vector<8x128xf32> to vector<8xf32>
    %14 = vector.shape_cast %13 : vector<8xf32> to vector<8x1xf32>
    %cst_5 = arith.constant 3.125000e-02 : f32
    %15 = vector.broadcast %cst_5 : f32 to vector<8x1xf32>
    %16 = arith.mulf %14, %15 : vector<8x1xf32>
    %17 = arith.mulf %11, %11 : vector<8x1xf32>
    %18 = arith.subf %16, %17 : vector<8x1xf32>
    %cst_6 = arith.constant 0.000000e+00 : f32
    %19 = vector.broadcast %cst_6 : f32 to vector<8x1xf32>
    %20 = arith.maximumf %18, %19 : vector<8x1xf32>
    %21 = vector.broadcast %11 : vector<8x1xf32> to vector<8x128xf32>
    %22 = arith.subf %1, %21 : vector<8x128xf32>
    %cst_7 = arith.constant 9.99999974E-6 : f32
    %23 = vector.broadcast %cst_7 : f32 to vector<8x1xf32>
    %24 = arith.addf %20, %23 : vector<8x1xf32>
    %25 = math.rsqrt %24 : vector<8x1xf32>
    %26 = vector.broadcast %25 : vector<8x1xf32> to vector<8x128xf32>
    %27 = arith.mulf %22, %26 : vector<8x128xf32>
    %28 = vector.broadcast %3 : vector<1x128xf32> to vector<8x128xf32>
    %29 = arith.mulf %27, %28 : vector<8x128xf32>
    %30 = vector.broadcast %4 : vector<1x128xf32> to vector<8x128xf32>
    %31 = arith.addf %29, %30 : vector<8x128xf32>
    %32 = arith.truncf %31 : vector<8x128xf32> to vector<8x128xbf16>
    %c0_8 = arith.constant 0 : index
    %c0_9 = arith.constant 0 : index
    %33 = vector.load %arg3[%c0_8, %c0_9] : memref<128x768xbf16, #tpu.memory_space<vmem>>, vector<128x768xbf16>
    %cst_10 = arith.constant dense<0.000000e+00> : vector<8x768xf32>
    %34 = tpu.matmul %32, %33, %cst_10 {dimension_numbers = #tpu.dot_dimension_numbers<[1], [0], [0], [1], [0, 0, 1, 1], [], []>} : vector<8x128xbf16>, vector<128x768xbf16>, vector<8x768xf32> -> vector<8x768xf32>
    %c0_11 = arith.constant 0 : index
    %c0_12 = arith.constant 0 : index
    %35 = vector.load %arg4[%c0_11, %c0_12] : memref<1x768xf32, #tpu.memory_space<vmem>>, vector<1x768xf32>
    %36 = vector.broadcast %35 : vector<1x768xf32> to vector<8x768xf32>
    %37 = arith.addf %34, %36 : vector<8x768xf32>
    %38 = arith.truncf %37 : vector<8x768xf32> to vector<8x768xbf16>
    %39 = vector.extract_strided_slice %38 {offsets = [0, 0], sizes = [8, 128], strides = [1, 1]} : vector<8x768xbf16> to vector<8x128xbf16>
    %40 = vector.extract_strided_slice %38 {offsets = [0, 128], sizes = [8, 128], strides = [1, 1]} : vector<8x768xbf16> to vector<8x128xbf16>
    %41 = vector.shape_cast %39 : vector<8x128xbf16> to vector<1x8x128xbf16>
    %42 = vector.shape_cast %40 : vector<8x128xbf16> to vector<1x8x128xbf16>
    %43 = tpu.concatenate %41, %42 in 0 : vector<1x8x128xbf16>, vector<1x8x128xbf16> -> vector<2x8x128xbf16>
    %44 = vector.extract_strided_slice %38 {offsets = [0, 256], sizes = [8, 128], strides = [1, 1]} : vector<8x768xbf16> to vector<8x128xbf16>
    %45 = vector.extract_strided_slice %38 {offsets = [0, 384], sizes = [8, 128], strides = [1, 1]} : vector<8x768xbf16> to vector<8x128xbf16>
    %46 = vector.shape_cast %44 : vector<8x128xbf16> to vector<1x8x128xbf16>
    %47 = vector.shape_cast %45 : vector<8x128xbf16> to vector<1x8x128xbf16>
    %48 = tpu.concatenate %46, %47 in 0 : vector<1x8x128xbf16>, vector<1x8x128xbf16> -> vector<2x8x128xbf16>
    %49 = vector.extract_strided_slice %38 {offsets = [0, 512], sizes = [8, 128], strides = [1, 1]} : vector<8x768xbf16> to vector<8x128xbf16>
    %50 = vector.extract_strided_slice %38 {offsets = [0, 640], sizes = [8, 128], strides = [1, 1]} : vector<8x768xbf16> to vector<8x128xbf16>
    %51 = vector.shape_cast %49 : vector<8x128xbf16> to vector<1x8x128xbf16>
    %52 = vector.shape_cast %50 : vector<8x128xbf16> to vector<1x8x128xbf16>
    %53 = tpu.concatenate %51, %52 in 0 : vector<1x8x128xbf16>, vector<1x8x128xbf16> -> vector<2x8x128xbf16>
    "tpu.trace_start"() <{level = 10 : i32, message = "hqd,hkd->hqk"}> : () -> ()
    %cst_13 = arith.constant dense<0.000000e+00> : vector<2x8x8xf32>
    %54 = tpu.matmul %43, %48, %cst_13 {dimension_numbers = #tpu.dot_dimension_numbers<[2], [2], [1], [1], [0, 0, 0, 1, 1, 1], [0], [0]>} : vector<2x8x128xbf16>, vector<2x8x128xbf16>, vector<2x8x8xf32> -> vector<2x8x8xf32>
    "tpu.trace_stop"() : () -> ()
    %cst_14 = arith.constant dense<0xFF800000> : vector<2x8xf32>
    %55 = vector.multi_reduction <maximumf>, %54, %cst_14 [2] : vector<2x8x8xf32> to vector<2x8xf32>
    %56 = vector.shape_cast %55 : vector<2x8xf32> to vector<2x8x1xf32>
    %57 = vector.broadcast %56 : vector<2x8x1xf32> to vector<2x8x8xf32>
    %58 = arith.subf %54, %57 : vector<2x8x8xf32>
    %59 = math.exp %58 : vector<2x8x8xf32>
    %cst_15 = arith.constant dense<0.000000e+00> : vector<2x8xf32>
    %60 = vector.multi_reduction <add>, %59, %cst_15 [2] : vector<2x8x8xf32> to vector<2x8xf32>
    %61 = vector.shape_cast %60 : vector<2x8xf32> to vector<2x8x1xf32>
    %62 = vector.broadcast %61 : vector<2x8x1xf32> to vector<2x8x8xf32>
    %63 = arith.divf %59, %62 : vector<2x8x8xf32>
    %64 = arith.truncf %63 : vector<2x8x8xf32> to vector<2x8x8xbf16>
    "tpu.trace_start"() <{level = 10 : i32, message = "hqk,hkd->hqd"}> : () -> ()
    %cst_16 = arith.constant dense<0.000000e+00> : vector<2x8x128xf32>
    %65 = tpu.matmul %64, %53, %cst_16 {dimension_numbers = #tpu.dot_dimension_numbers<[2], [1], [1], [2], [0, 0, 0, 1, 1, 2], [0], [0]>} : vector<2x8x8xbf16>, vector<2x8x128xbf16>, vector<2x8x128xf32> -> vector<2x8x128xf32>
    "tpu.trace_stop"() : () -> ()
    %66 = vector.extract_strided_slice %65 {offsets = [0, 0, 0], sizes = [1, 8, 128], strides = [1, 1, 1]} : vector<2x8x128xf32> to vector<1x8x128xf32>
    %67 = vector.shape_cast %66 : vector<1x8x128xf32> to vector<8x128xf32>
    %68 = vector.extract_strided_slice %65 {offsets = [1, 0, 0], sizes = [1, 8, 128], strides = [1, 1, 1]} : vector<2x8x128xf32> to vector<1x8x128xf32>
    %69 = vector.shape_cast %68 : vector<1x8x128xf32> to vector<8x128xf32>
    %70 = tpu.concatenate %67, %69 in 1 : vector<8x128xf32>, vector<8x128xf32> -> vector<8x256xf32>
    %71 = arith.truncf %70 : vector<8x256xf32> to vector<8x256xbf16>
    %c0_17 = arith.constant 0 : index
    %c0_18 = arith.constant 0 : index
    %72 = vector.load %arg5[%c0_17, %c0_18] : memref<256x128xbf16, #tpu.memory_space<vmem>>, vector<256x128xbf16>
    %cst_19 = arith.constant dense<0.000000e+00> : vector<8x128xf32>
    %73 = tpu.matmul %71, %72, %cst_19 {dimension_numbers = #tpu.dot_dimension_numbers<[1], [0], [0], [1], [0, 0, 1, 1], [], []>} : vector<8x256xbf16>, vector<256x128xbf16>, vector<8x128xf32> -> vector<8x128xf32>
    %74 = vector.broadcast %7 : vector<1x128xf32> to vector<8x128xf32>
    %75 = arith.addf %73, %74 : vector<8x128xf32>
    %76 = arith.addf %75, %1 : vector<8x128xf32>
    %cst_20 = arith.constant dense<0.000000e+00> : vector<8xf32>
    %77 = vector.multi_reduction <add>, %76, %cst_20 [1] : vector<8x128xf32> to vector<8xf32>
    %78 = vector.shape_cast %77 : vector<8xf32> to vector<8x1xf32>
    %cst_21 = arith.constant 3.125000e-02 : f32
    %79 = vector.broadcast %cst_21 : f32 to vector<8x1xf32>
    %80 = arith.mulf %78, %79 : vector<8x1xf32>
    %81 = arith.mulf %76, %76 : vector<8x128xf32>
    %cst_22 = arith.constant dense<0.000000e+00> : vector<8xf32>
    %82 = vector.multi_reduction <add>, %81, %cst_22 [1] : vector<8x128xf32> to vector<8xf32>
    %83 = vector.shape_cast %82 : vector<8xf32> to vector<8x1xf32>
    %cst_23 = arith.constant 3.125000e-02 : f32
    %84 = vector.broadcast %cst_23 : f32 to vector<8x1xf32>
    %85 = arith.mulf %83, %84 : vector<8x1xf32>
    %86 = arith.mulf %80, %80 : vector<8x1xf32>
    %87 = arith.subf %85, %86 : vector<8x1xf32>
    %cst_24 = arith.constant 0.000000e+00 : f32
    %88 = vector.broadcast %cst_24 : f32 to vector<8x1xf32>
    %89 = arith.maximumf %87, %88 : vector<8x1xf32>
    %90 = vector.broadcast %80 : vector<8x1xf32> to vector<8x128xf32>
    %91 = arith.subf %76, %90 : vector<8x128xf32>
    %cst_25 = arith.constant 9.99999974E-6 : f32
    %92 = vector.broadcast %cst_25 : f32 to vector<8x1xf32>
    %93 = arith.addf %89, %92 : vector<8x1xf32>
    %94 = math.rsqrt %93 : vector<8x1xf32>
    %95 = vector.broadcast %94 : vector<8x1xf32> to vector<8x128xf32>
    %96 = arith.mulf %91, %95 : vector<8x128xf32>
    %97 = vector.broadcast %5 : vector<1x128xf32> to vector<8x128xf32>
    %98 = arith.mulf %96, %97 : vector<8x128xf32>
    %99 = vector.broadcast %6 : vector<1x128xf32> to vector<8x128xf32>
    %100 = arith.addf %98, %99 : vector<8x128xf32>
    %101 = arith.truncf %100 : vector<8x128xf32> to vector<8x128xbf16>
    %c0_26 = arith.constant 0 : index
    %c0_27 = arith.constant 0 : index
    %102 = vector.load %arg6[%c0_26, %c0_27] : memref<8x128xbf16, #tpu.memory_space<vmem>>, vector<8x128xbf16>
    tpu.vector_store %arg6[%c0_26, %c0_27], %101 {strides = array<i32>} : memref<8x128xbf16, #tpu.memory_space<vmem>>, vector<8x128xbf16>,
    return
  }
  func.func @transform_0(%arg0: i32) -> (i32, i32) {
    %c0_i32 = arith.constant 0 : i32
    %c0_i32_0 = arith.constant 0 : i32
    return %arg0, %c0_i32 : i32, i32
  }
  func.func @transform_1(%arg0: i32) -> (i32, i32) {
    %c0_i32 = arith.constant 0 : i32
    %c0_i32_0 = arith.constant 0 : i32
    %c0_i32_1 = arith.constant 0 : i32
    return %c0_i32, %c0_i32_0 : i32, i32
  }
  func.func @transform_2(%arg0: i32) -> (i32, i32) {
    %c0_i32 = arith.constant 0 : i32
    %c0_i32_0 = arith.constant 0 : i32
    %c0_i32_1 = arith.constant 0 : i32
    return %c0_i32, %c0_i32_0 : i32, i32
  }
  func.func @transform_3(%arg0: i32) -> (i32, i32) {
    %c0_i32 = arith.constant 0 : i32
    %c0_i32_0 = arith.constant 0 : i32
    %c0_i32_1 = arith.constant 0 : i32
    return %c0_i32, %c0_i32_0 : i32, i32
  }
  func.func @transform_4(%arg0: i32) -> (i32, i32) {
    %c0_i32 = arith.constant 0 : i32
    %c0_i32_0 = arith.constant 0 : i32
    %c0_i32_1 = arith.constant 0 : i32
    return %c0_i32, %c0_i32_0 : i32, i32
  }
  func.func @transform_5(%arg0: i32) -> (i32, i32) {
    %c0_i32 = arith.constant 0 : i32
    %c0_i32_0 = arith.constant 0 : i32
    return %arg0, %c0_i32 : i32, i32
  }
}

</mosaic_0001>

<bundles_post_ra>
// kernel: tpu_custom_call.1
= control target key start
LH: loop header
LB: loop body
LE: loop exit
PB: predicated region body
PF: predicated region fallthrough
CT: control target
= control target key end

     0   :  { %10 = vsyncpa [#allocation3], 0  ;;  %s2136_s0 = inlined_call_operand.hbm [shape: bf16[16,128], index: 0, kind: input, shape index: {}]   ;;  %s2137_s1 = inlined_call_operand.hbm [shape: f32[8,128], index: 1, kind: input, shape index: {}]   ;;  %s2138_s2 = inlined_call_operand.hbm [shape: bf16[128,768], index: 2, kind: input, shape index: {}]   ;;  %s2139_s3 = inlined_call_operand.vmem [shape: f32[1,768], index: 3, kind: input, shape index: {}]   ;;  %s2140_s4 = inlined_call_operand.hbm [shape: bf16[256,128], index: 4, kind: input, shape index: {}]   ;;  %s2141_s5 = inlined_call_operand.hbm [shape: bf16[16,128], index: 5, kind: output, shape index: {}]  }
   0x1   :  { %12 = vsyncpa [#allocation3 + $0x1], 0 }
   0x2   :  { %13 = vsyncpa [#allocation6], 0 }
   0x3   :  { %14 = vsyncpa [#allocation9], 0 }
   0x4   :  { %15 = vsyncpa [#allocation4], 0 }
   0x5   :  { %17 = vsyncpa [#allocation4 + $0x1], 0  ;;  %s1826_s18 = smov 0   ;;  %s1828_s19 = smov 0  }
   0x6   :  { %s1830_s20 = smov 0   ;;  %s1832_s21 = smov 0  }
   0x7 LB: > { %s1847_s22 = sadd.s32 4294967295, %s1782_s21   ;;  %s1272_s23 = sadd.s32 4294967294, %s1782_s21   ;;  %s1782_s21 = sphi %s1832_s21, %s2164_s21   ;;  %s1778_s20 = sphi %s1830_s20, %s2163_s20   ;;  %s1774_s19 = sphi %s1828_s19, %s2162_s19   ;;  %s1770_s18 = sphi %s1826_s18, %s2161_s18  }
   0x8   : > { %p43_p0 = scmp.ne.s32.totalorder %s1774_s19, %s1770_s18  ;;  %p2142_p1 = scmp.eq.s32.totalorder %s1847_s22, 0 }
   0x9   : > { %p157_p3 = scmp.eq.s32.totalorder %s1272_s23, 1  ;;  %p1273_p5 = scmp.ge.s32.totalorder %s1782_s21, 1 }
   0xa   : > { %p1856_p4 = por %p2142_p1, %p43_p0  ;;  %p164_p7 = scmp.lt.s32.totalorder %s1782_s21, 3 }
   0xb   : > { %p1861_p6 = por %p157_p3, %p43_p0  ;;  %s1784_s27 = smov [#allocation5]  }
   0xc   : > { %s2145_s24 = scalar_select %p1856_p4, 1, 0 }
   0xd   : > { %s2146_s25 = scalar_select %p1861_p6, 1, 0 }
   0xe   : > { %p1866_p8 = pnand %p1273_p5, %p164_p7  ;;  %s177_s28 = sshll.u32 %s1784_s27, 4  ;;  %s178_s28 = int_to_ptr.vmem [resolvable:$true] %s177_s28 }
   0xf   : > { %s1785_s29 = smov [#allocation7]   ;;  %s1786_s7 = smov [#allocation8]  }
  0x10   : > { %s2147_s26 = scalar_select %p1866_p8, 1, 0 }
  0x11   : > { %p1426_p10 = pneg %p1866_p8  ;;  %s187_s30 = sshll.u32 %s1785_s29, 4  ;;  %s1879_s30 = int_to_ptr.vmem [resolvable:$true] %s187_s30 }
  0x12   : > { %s1881_s8 = sshll.u32 %s1786_s7, 4  ;;  %s1594_s11 = scalar_lea.hbm %s2137_s1, 128  ;;  %s204_s8 = int_to_ptr.vmem [resolvable:$true] %s1881_s8 }
  0x13   : > { %p1875_p11 = pnand %p1426_p10, %p2142_p1  ;;  %p1595_p12 = scmp.ne.s32.totalorder %s2137_s1, %s1594_s11 }
  0x14   : > { %p1601_p5 = scmp.lt.u32.totalorder %s1594_s11, %s2137_s1 }
  0x15   : > { %p1891_p13 = pneg %p1875_p11 }
  0x17   : > { %p1597_p0 = pnand %p1891_p13, %p1595_p12 }
  0x19   : > { %p1598_p3 = pneg %p1597_p0 }
  0x1b   : > { %p1603_p7 = pnand %p1601_p5, %p1598_p3 }
  0x1d   : > { %1606 = shalt.err (!%p1603_p7)
}
  0x1e   : > { %s1607_s17 = scalar_lea.vmem %s178_s28, 128  ;;  %p1615_p2 = scmp.lt.s32.totalorder %s178_s28, %s178_s28 }
  0x1f   : > { %p1608_p10 = scmp.ne.s32.totalorder %s178_s28, %s1607_s17  ;;  %p1616_p6 = scmp.lt.s32.totalorder %s1607_s17, %s1607_s17 }
  0x21   : > { %p1610_p9 = pnand %p1608_p10, %p1891_p13  ;;  %p1617_p4 = por %p1616_p6, %p1615_p2 }
  0x23   : > { %p1611_p1 = pneg %p1610_p9 }
  0x25   : > { %p1618_p8 = pnand %p1617_p4, %p1611_p1 }
  0x27   : > { %1621 = shalt.err (!%p1618_p8)
}
  0x28   : > { %1429 = dma.hbm_to_vmem [thread:$0]  (!%p1875_p11), %s2137_s1, 128, %s178_s28, [#allocation6]  }
  0x29   : > { %s1622_s9 = scalar_lea.hbm %s2138_s2, 6144 }
  0x2a   : > { %p1623_p9 = scmp.ne.s32.totalorder %s2138_s2, %s1622_s9  ;;  %p1629_p1 = scmp.lt.u32.totalorder %s1622_s9, %s2138_s2 }
  0x2c   : > { %p1625_p12 = pnand %p1623_p9, %p1891_p13 }
  0x2e   : > { %p1626_p2 = pneg %p1625_p12 }
  0x30   : > { %p1631_p4 = pnand %p1629_p1, %p1626_p2 }
  0x32   : > { %1634 = shalt.err (!%p1631_p4)
}
  0x33   : > { %s1635_s28 = scalar_lea.vmem %s1879_s30, 6144  ;;  %p1643_p3 = scmp.lt.s32.totalorder %s1879_s30, %s1879_s30 }
  0x34   : > { %p1636_p6 = scmp.ne.s32.totalorder %s1879_s30, %s1635_s28  ;;  %p1644_p5 = scmp.lt.s32.totalorder %s1635_s28, %s1635_s28 }
  0x36   : > { %p1638_p8 = pnand %p1636_p6, %p1891_p13  ;;  %p1645_p7 = por %p1644_p5, %p1643_p3 }
  0x38   : > { %p1639_p0 = pneg %p1638_p8 }
  0x3a   : > { %p1646_p10 = pnand %p1645_p7, %p1639_p0 }
  0x3c   : > { %1649 = shalt.err (!%p1646_p10)
}
  0x3d   : > { %s1787_s15 = smov 384   ;;  %s1788_s16 = smov 24  }
  0x3e   : > { %1432 = dma.hbm_to_vmem [thread:$0]  (!%p1875_p11), %s2138_s2, 6144, %s1879_s30, [#allocation6], %s1787_s15, %s1787_s15, %s1788_s16  }
  0x3f   : > { %s1650_s7 = scalar_lea.hbm %s2140_s4, 2048 }
  0x40   : > { %p1651_p9 = scmp.ne.s32.totalorder %s2140_s4, %s1650_s7  ;;  %p1657_p1 = scmp.lt.u32.totalorder %s1650_s7, %s2140_s4 }
  0x42   : > { %p1653_p12 = pnand %p1651_p9, %p1891_p13 }
  0x44   : > { %p1654_p2 = pneg %p1653_p12 }
  0x46   : > { %p1659_p4 = pnand %p1657_p1, %p1654_p2 }
  0x48   : > { %1662 = shalt.err (!%p1659_p4)
}
  0x49   : > { %s1663_s13 = scalar_lea.vmem %s204_s8, 2048  ;;  %p1671_p3 = scmp.lt.s32.totalorder %s204_s8, %s204_s8 }
  0x4a   : > { %p1664_p6 = scmp.ne.s32.totalorder %s204_s8, %s1663_s13  ;;  %p1672_p5 = scmp.lt.s32.totalorder %s1663_s13, %s1663_s13 }
  0x4c   : > { %p1666_p8 = pnand %p1664_p6, %p1891_p13  ;;  %p1673_p7 = por %p1672_p5, %p1671_p3 }
  0x4e   : > { %p1667_p0 = pneg %p1666_p8 }
  0x50   : > { %p1674_p10 = pnand %p1673_p7, %p1667_p0 }
  0x52   : > { %1677 = shalt.err (!%p1674_p10)
}
  0x53   : > { %s1789_s30 = smov 64   ;;  %s1790_s14 = smov 4  }
  0x54   : > { %1435 = dma.hbm_to_vmem [thread:$0]  (!%p1875_p11), %s2140_s4, 2048, %s204_s8, [#allocation9], %s1789_s30, %s1789_s30, %s1790_s14  }
  0x55   : > { %s1950_s16 = sadd.s32 1, %s1782_s21   ;;  %s30_s23 = sadd.s32 1, %s1778_s20 }
  0x56   : > { %s27_s17 = ssub.s32 %s1782_s21, %s1950_s16  ;;  %p37_p9 = scmp.ne.s32.totalorder %s1778_s20, %s1774_s19 }
  0x57   : > { %p28_p13 = scmp.eq.s32.totalorder %s27_s17, 0  ;;  %p38_p12 = scmp.eq.s32.totalorder %s1782_s21, 0 }
  0x58   : > { %p1447_p2 = scmp.lt.s32.totalorder %s1782_s21, 2  ;;  %p2150_p4 = scmp.eq.s32.totalorder %s1847_s22, 1 }
  0x59   : > { %s1960_s27 = scalar_select %p28_p13, %s1778_s20, %s30_s23  }
  0x5a   : > { %p39_p1 = por %p38_p12, %p37_p9  ;;  %p1964_p6 = por %p2150_p4, %p37_p9 }
  0x5b   : > { %s217_s6 = sand.u32 1, %s1778_s20   ;;  %s1279_s7 = sshll.u32 %s1782_s21, 6 }
  0x5c   : > { %s1278_s8 = sshll.u32 %s217_s6, 2  ;;  %s1973_s11 = scalar_lea.hbm %s2136_s0, %s1279_s7 }
  0x5d   : > { %s221_s12 = scalar_lea.vmem [#allocation2], %s1278_s8  ;;  %p1975_p11 = pnand %p1447_p2, %p39_p1 }
  0x5e   : > { %s228_s13 = sshll.u32 %s221_s12, 4  ;;  %s218_s14 = scalar_lea.sflag [#allocation3], %s217_s6  ;;  %s1979_s13 = int_to_ptr.vmem [resolvable:$true] %s228_s13 }
  0x5f   : > { %s1678_s28 = scalar_lea.hbm %s1973_s11, 64  ;;  %p1680_p0 = pneg %p1975_p11 }
  0x60   : > { %p1679_p8 = scmp.ne.s32.totalorder %s1973_s11, %s1678_s28  ;;  %s1683_s23 = scalar_lea.hbm %s2136_s0, 128 }
  0x61   : > { %p1684_p7 = scmp.lt.u32.totalorder %s1973_s11, %s2136_s0  ;;  %p1685_p10 = scmp.lt.u32.totalorder %s1683_s23, %s1678_s28 }
  0x62   : > { %p1681_p3 = pnand %p1680_p0, %p1679_p8  ;;  %p1687_p9 = scmp.lt.u32.totalorder %s1678_s28, %s1973_s11 }
  0x63   : > { %p1686_p13 = por %p1685_p10, %p1684_p7 }
  0x64   : > { %p1682_p5 = pneg %p1681_p3 }
  0x65   : > { %p1688_p12 = por %p1687_p9, %p1686_p13 }
  0x67   : > { %p1689_p2 = pnand %p1688_p12, %p1682_p5 }
  0x69   : > { %1692 = shalt.err (!%p1689_p2)
}
  0x6a   : > { %s1693_s6 = scalar_lea.vmem %s1979_s13, 64  ;;  %s1791_s9 = smov [#allocation2]  }
  0x6b   : > { %p1694_p1 = scmp.ne.s32.totalorder %s1979_s13, %s1693_s6  ;;  %s1698_s10 = sshll.u32 %s1791_s9, 4  ;;  %s1699_s10 = int_to_ptr.vmem [resolvable:$false] %s1698_s10 }
  0x6c   : > { %s1700_s12 = scalar_lea.vmem %s1699_s10, 128  ;;  %p1701_p3 = scmp.lt.s32.totalorder %s1979_s13, %s1699_s10 }
  0x6d   : > { %p1696_p4 = pnand %p1694_p1, %p1680_p0  ;;  %p1702_p7 = scmp.lt.s32.totalorder %s1700_s12, %s1693_s6 }
  0x6f   : > { %p1697_p8 = pneg %p1696_p4  ;;  %p1703_p10 = por %p1702_p7, %p1701_p3 }
  0x71   : > { %p1704_p13 = pnand %p1703_p10, %p1697_p8 }
  0x73   : > { %1707 = shalt.err (!%p1704_p13)
}
  0x74   : > { %1439 = dma.hbm_to_vmem [thread:$0]  (!%p1975_p11), %s1973_s11, 64, %s1979_s13, %s218_s14  }
  0x75   : > { %p2153_p5 = scmp.ne.s32.totalorder %s2147_s26, 0 }
  0x76   : > { %s2009_s28 = sand.u32 (!%p2153_p5), 1, %s1774_s19   ;;  %p2154_p0 = scmp.ne.s32.totalorder (!%p2153_p5), %s2145_s24, 0 }
  0x77   : > { %237 = sbr.rel (%p2153_p5) target bundleno = 1688 (0x698), region = 40  ;;  %s1281_s15 = sshll.u32 (!%p2153_p5), %s2009_s28, 2 }
  0x78   : > { %s240_s17 = scalar_lea.sflag (!%p2153_p5), [#allocation3], %s2009_s28  ;;  %s243_s23 = scalar_lea.vmem (!%p2153_p5), [#allocation2], %s1281_s15 }
  0x7e   : > { %1753 = dma.done.wait (%p2154_p0), %s240_s17, 64  }
  0x7f   : > { %1755 = vsyncadd (%p2154_p0), %s240_s17, 4294967232  ;;  %p2155_p11 = scmp.eq.s32.totalorder %s1847_s22, 0 }
  0x81   : > { %1757 = dma.done.wait (%p2155_p11), [#allocation6], 6272   ;;  %p2156_p9 = pmov %p2155_p11 }
  0x83   : > { %1759 = vsyncadd (%p2156_p9), [#allocation6], 4294961024  ;;  %p2157_p12 = pmov %p2156_p9 }
  0x84   : > { %p2158_p2 = pmov %p2156_p9 }
  0x85   : > { %1761 = dma.done.wait (%p2157_p12), [#allocation9], 2048  }
  0x86   : > { %1763 = vsyncadd (%p2158_p2), [#allocation9], 4294965248  ;;  %v283_v0 = vld [vmem:[%s243_s23] sm:$0xf]  ;;  %v1494_v2 = vld [vmem:[#allocation7 + $0x4] ss:$24 sps:$4 sm:$0xff]   ;;  %v300_v44 = vlaneseq }
  0x87   : > { %v2027_v1 = vunpack.c.l.bf16 %v283_v0  ;;  %v1496_v3 = vld [vmem:[#allocation7] ss:$24 sps:$4 sm:$0xff]   ;;  %v1497_v4 = vld [vmem:[#allocation7 + $0xc] ss:$24 sps:$4 sm:$0xff]   ;;  %631 = vmatprep.subr.bf16.mxu0 %v1494_v2  ;;  %v1502_v8 = vld [vmem:[#allocation7 + $0x30] ss:$24 sps:$4 sm:$0xff]  }
  0x88   : > { %632 = vmatpush1.bf16.msra.mxu0 %v1496_v3  ;;  %672 = vmatprep.subr.bf16.mxu1 %v1497_v4  ;;  %v1499_v6 = vld [vmem:[#allocation7 + $0x8] ss:$24 sps:$4 sm:$0xff]   ;;  %v1500_v7 = vld [vmem:[#allocation7 + $0x34] ss:$24 sps:$4 sm:$0xff]   ;;  %v1505_v10 = vld [vmem:[#allocation7 + $0x38] ss:$24 sps:$4 sm:$0xff]  }
  0x89   : > { %286 = vadd.xlane.f32.xlu0 %v2027_v1  ;;  %v289_v5 = vmul.f32 %v2027_v1, %v2027_v1  ;;  %673 = vmatpush1.bf16.msra.mxu1 %v1499_v6  ;;  %v1503_v9 = vld [vmem:[#allocation7 + $0x3c] ss:$24 sps:$4 sm:$0xff]   ;;  %v1508_v12 = vld [vmem:[#allocation7 + $0x60] ss:$24 sps:$4 sm:$0xff]   ;;  %v1509_v13 = vld [vmem:[#allocation7 + $0x6c] ss:$24 sps:$4 sm:$0xff]  }
  0x8a   : > { %633 = vmatprep.subr.bf16.mxu0 %v1500_v7  ;;  %674 = vmatprep.subr.bf16.mxu1 %v1503_v9  ;;  %v1506_v11 = vld [vmem:[#allocation7 + $0x64] ss:$24 sps:$4 sm:$0xff]   ;;  %v1511_v14 = vld [vmem:[#allocation7 + $0x68] ss:$24 sps:$4 sm:$0xff]   ;;  %v1512_v15 = vld [vmem:[#allocation7 + $0x94] ss:$24 sps:$4 sm:$0xff]  }
  0x8b   : > { %v1514_v16 = vld [vmem:[#allocation7 + $0x90] ss:$24 sps:$4 sm:$0xff]   ;;  %v1515_v17 = vld [vmem:[#allocation7 + $0x9c] ss:$24 sps:$4 sm:$0xff]   ;;  %v1520_v20 = vld [vmem:[#allocation7 + $0xc0] ss:$24 sps:$4 sm:$0xff]  }
  0x8c   : > { %634 = vmatpush1.bf16.msra.mxu0 %v1502_v8  ;;  %v1517_v18 = vld [vmem:[#allocation7 + $0x98] ss:$24 sps:$4 sm:$0xff]   ;;  %v1518_v19 = vld [vmem:[#allocation7 + $0xc4] ss:$24 sps:$4 sm:$0xff]   ;;  %v1523_v22 = vld [vmem:[#allocation7 + $0xc8] ss:$24 sps:$4 sm:$0xff]  }
  0x8d   : > { %290 = vadd.xlane.f32.xlu0 %v289_v5  ;;  %675 = vmatpush1.bf16.msra.mxu1 %v1505_v10  ;;  %v1521_v21 = vld [vmem:[#allocation7 + $0xcc] ss:$24 sps:$4 sm:$0xff]   ;;  %v1527_v24 = vld [vmem:[#allocation7 + $0xfc] ss:$24 sps:$4 sm:$0xff]   ;;  %v1526_v25 = vld [vmem:[#allocation7 + $0xf0] ss:$24 sps:$4 sm:$0xff]  }
  0x8e   : > { %635 = vmatprep.subr.bf16.mxu0 %v1506_v11  ;;  %676 = vmatprep.subr.bf16.mxu1 %v1509_v13  ;;  %v1524_v23 = vld [vmem:[#allocation7 + $0xf4] ss:$24 sps:$4 sm:$0xff]   ;;  %v1529_v26 = vld [vmem:[#allocation7 + $0xf8] ss:$24 sps:$4 sm:$0xff]   ;;  %v1530_v27 = vld [vmem:[#allocation7 + $0x124] ss:$24 sps:$4 sm:$0xff]  }
  0x8f   : > { %v1532_v28 = vld [vmem:[#allocation7 + $0x120] ss:$24 sps:$4 sm:$0xff]   ;;  %v1533_v29 = vld [vmem:[#allocation7 + $0x12c] ss:$24 sps:$4 sm:$0xff]   ;;  %v1792_v31 = vmov 0   ;;  %v2032_v46 = vshrl.u32 %v300_v44, 7 }
  0x90   : > { %636 = vmatpush1.bf16.msra.mxu0 %v1508_v12  ;;  %v1535_v30 = vld [vmem:[#allocation7 + $0x128] ss:$24 sps:$4 sm:$0xff]   ;;  %663 = vmatprep.mubr.bf16.mxu0 %v1792_v31  ;;  %v1536_v32 = vld [vmem:[#allocation7 + $0x154] ss:$24 sps:$4 sm:$0xff]   ;;  %v1541_v35 = vld [vmem:[#allocation7 + $0x158] ss:$24 sps:$4 sm:$0xff]  }
  0x91   : > { %677 = vmatpush1.bf16.msra.mxu1 %v1511_v14  ;;  %637 = vmatprep.subr.bf16.mxu0 %v1512_v15  ;;  %v1539_v33 = vld [vmem:[#allocation7 + $0x15c] ss:$24 sps:$4 sm:$0xff]   ;;  %v1538_v34 = vld [vmem:[#allocation7 + $0x150] ss:$24 sps:$4 sm:$0xff]   ;;  %v302_v47 = vsub.s32 0, %v2032_v46  ;;  %v307_v49 = vsub.s32 1, %v2032_v46 }
  0x92   : > { %678 = vmatprep.subr.bf16.mxu1 %v1515_v17  ;;  %704 = vmatprep.mubr.bf16.mxu1 %v1792_v31  ;;  %v1544_v36 = vld [vmem:[#allocation7 + $0x14] ss:$24 sps:$4 sm:$0xff]   ;;  %v2035_v48 = vld [vmem:[#allocation5] sm:$0xff]  ;;  %v1542_v57 = vld [vmem:[#allocation7 + $0x10] ss:$24 sps:$4 sm:$0xff]   ;;  %v1793_v10 = vmov 0.0  }
  0x93   : > { %v303_v51 = vrot.slane %v2035_v48, %v302_v47  ;;  %v308_v54 = vrot.slane %v2035_v48, %v307_v49  ;;  %v1547_v59 = vld [vmem:[#allocation7 + $0x44] ss:$24 sps:$4 sm:$0xff]   ;;  %v1545_v60 = vld [vmem:[#allocation7 + $0x40] ss:$24 sps:$4 sm:$0xff]   ;;  %v1550_v61 = vld [vmem:[#allocation7 + $0x74] ss:$24 sps:$4 sm:$0xff]  }
  0x94   : > { %638 = vmatpush1.bf16.msra.mxu0 %v1514_v16  ;;  %v1548_v62 = vld [vmem:[#allocation7 + $0x70] ss:$24 sps:$4 sm:$0xff]   ;;  %v1553_v63 = vld [vmem:[#allocation7 + $0xa4] ss:$24 sps:$4 sm:$0xff]   ;;  %v1551_v0 = vld [vmem:[#allocation7 + $0xa0] ss:$24 sps:$4 sm:$0xff]  }
  0x95   : > { %679 = vmatpush1.bf16.msra.mxu1 %v1517_v18  ;;  %639 = vmatprep.subr.bf16.mxu0 %v1518_v19  ;;  %v1556_v2 = vld [vmem:[#allocation7 + $0xd4] ss:$24 sps:$4 sm:$0xff]   ;;  %v1554_v3 = vld [vmem:[#allocation7 + $0xd0] ss:$24 sps:$4 sm:$0xff]   ;;  %v1559_v4 = vld [vmem:[#allocation7 + $0x104] ss:$24 sps:$4 sm:$0xff]  }
  0x96   : > { %680 = vmatprep.subr.bf16.mxu1 %v1521_v21  ;;  %v1557_v5 = vld [vmem:[#allocation7 + $0x100] ss:$24 sps:$4 sm:$0xff]   ;;  %v1562_v6 = vld [vmem:[#allocation7 + $0x134] ss:$24 sps:$4 sm:$0xff]   ;;  %v1560_v7 = vld [vmem:[#allocation7 + $0x130] ss:$24 sps:$4 sm:$0xff]  }
  0x97   : > { %v1565_v8 = vld [vmem:[#allocation7 + $0x164] ss:$24 sps:$4 sm:$0xff]   ;;  %v1563_v9 = vld [vmem:[#allocation7 + $0x160] ss:$24 sps:$4 sm:$0xff]   ;;  %vm1794_vm0 = vmmov 0   ;;  %v371_v11 = vsub.s32 2, %v2032_v46 }
  0x98   : > { %640 = vmatpush1.bf16.msra.mxu0 %v1520_v20  ;;  %v359_v12 = vld [vmem:[%s2139_s3] sm:$0x3f]  ;;  %v375_v15 = vsub.s32 3, %v2032_v46  ;;  %vm868_vm1 = vcmask 1043456   ;;  %vm840_vm2 = vcmask 64512   ;;  %s1353_s11 = sshll.u32 %s1847_s22, 6 }
  0x99   : > { %681 = vmatpush1.bf16.msra.mxu1 %v1523_v22  ;;  %641 = vmatprep.subr.bf16.mxu0 %v1524_v23  ;;  %v364_v13 = vrot.slane %v359_v12, %v302_v47  ;;  %v372_v14 = vrot.slane %v359_v12, %v371_v11  ;;  %s281_s13 = scalar_lea.vmem [#allocation10], %s1281_s15  ;;  %s2092_s8 = scalar_lea.hbm %s2141_s5, %s1353_s11 }
  0x9a   : > { %682 = vmatprep.subr.bf16.mxu1 %v1527_v24  ;;  %s1173_s30 = sshll.u32 %s281_s13, 4  ;;  %s1160_s6 = scalar_lea.sflag [#allocation4], %s2009_s28  ;;  %s2094_s30 = int_to_ptr.vmem [resolvable:$true] %s1173_s30 }
  0x9b   : > { %s1708_s9 = scalar_lea.vmem %s2094_s30, 64  ;;  %s1795_s22 = smov [#allocation10]  }
  0x9c   : > { %642 = vmatpush1.bf16.msra.mxu0 %v1526_v25  ;;  %v376_v25 = vrot.slane %v359_v12, %v375_v15  ;;  %p1709_p1 = scmp.ne.s32.totalorder %s2094_s30, %s1708_s9  ;;  %s1712_s10 = sshll.u32 %s1795_s22, 4  ;;  %s1713_s10 = int_to_ptr.vmem [resolvable:$false] %s1712_s10 }
  0x9d   : > { %683 = vmatpush1.bf16.msra.mxu1 %v1529_v26  ;;  %643 = vmatprep.subr.bf16.mxu0 %v1530_v27  ;;  %s1714_s12 = scalar_lea.vmem %s1713_s10, 128  ;;  %p1715_p3 = scmp.lt.s32.totalorder %s2094_s30, %s1713_s10 }
  0x9e   : > { %684 = vmatprep.subr.bf16.mxu1 %v1533_v29  ;;  %p1710_p4 = pnand %p1709_p1, %p1964_p6  ;;  %p1716_p7 = scmp.lt.s32.totalorder %s1714_s12, %s1708_s9 }
  0xa0   : > { %644 = vmatpush1.bf16.msra.mxu0 %v1532_v28  ;;  %p1711_p8 = pneg %p1710_p4  ;;  %p1717_p10 = por %p1716_p7, %p1715_p3 }
  0xa1   : > { %685 = vmatpush1.bf16.msra.mxu1 %v1535_v30  ;;  %645 = vmatprep.subr.bf16.mxu0 %v1536_v32  ;;  %v368_v30 = vrot.slane %v359_v12, %v307_v49 }
  0xa2   : > { %686 = vmatprep.subr.bf16.mxu1 %v1539_v33  ;;  %p1718_p13 = pnand %p1717_p10, %p1711_p8 }
  0xa4   : > { %646 = vmatpush1.bf16.msra.mxu0 %v1538_v34  ;;  %v379_v34 = vsub.s32 4, %v2032_v46 }
  0xa5   : > { %687 = vmatpush1.bf16.msra.mxu1 %v1541_v35  ;;  %713 = vmatprep.subr.bf16.mxu0 %v1544_v36  ;;  %v383_v35 = vsub.s32 5, %v2032_v46 }
  0xa6   : > { %1386 = vmatprep.subr.bf16.mxu1 %v1793_v10  ;;  %v380_v36 = vrot.slane %v359_v12, %v379_v34 }
 0x116   : > { %v287_v37 = vpop.xlane.xlu0 %286 }
 0x117   : > { %v288_v38 = vmul.f32 0.03125, %v287_v37  ;;  %v384_v37 = vrot.slane %v359_v12, %v383_v35  ;;  %v1569_v12 = vld [vmem:[#allocation8 + $0x8] sm:$0xff]  }
 0x119   : > { %v293_v40 = vmul.f32 %v288_v38, %v288_v38  ;;  %v296_v50 = vsub.f32 %v2027_v1, %v288_v38 }
 0x11a   : > { %v291_v39 = vpop.xlane.xlu0 %290 }
 0x11b   : > { %v292_v41 = vmul.f32 0.03125, %v291_v39 }
 0x11d   : > { %v294_v42 = vsub.f32 %v292_v41, %v293_v40 }
 0x11f   : > { %v295_v43 = vmax.f32 %v294_v42, 0.0 }
 0x121   : > { %v297_v45 = vadd.f32 1e-05, %v295_v43 }
 0x123   : > { %1582 = vrsqrt.f32 %v297_v45 }
 0x12d   : > { %v1583_v52 = vpop.eup %1582 }
 0x12e   : > { %v299_v53 = vmul.f32 %v1583_v52, %v296_v50 }
 0x130   : > { %v304_v55 = vmul.f32 %v303_v51, %v299_v53 }
 0x132   : > { %v309_v56 = vadd.f32 %v308_v54, %v304_v55 }
 0x134   : > { %v310_v58 = vpack.c.bf16 %v309_v56, %v309_v56 }
 0x136   : > { %664 = vmatmul.mubr.bf16.vlgmr.msra.gmra.mrb[0].mxu0 %v310_v58  ;;  %705 = vmatmul.mubr.bf16.vlgmr.msra.gmra.mrb[0].mxu1 %v310_v58 }
 0x137   : > { %714 = vmatpush1.bf16.msra.mxu0 %v1542_v57  ;;  %745 = vmatprep.mubr.bf16.mxu0 %v1792_v31 }
 0x138   : > { %715 = vmatprep.subr.bf16.mxu0 %v1547_v59  ;;  %1388 = vmatprep.mubr.msk.bf16.mxu1 %vm1794_vm0, %v1793_v10 }
 0x13b   : > { %716 = vmatpush1.bf16.msra.mxu0 %v1545_v60 }
 0x13c   : > { %717 = vmatprep.subr.bf16.mxu0 %v1550_v61 }
 0x13f   : > { %718 = vmatpush1.bf16.msra.mxu0 %v1548_v62 }
 0x140   : > { %719 = vmatprep.subr.bf16.mxu0 %v1553_v63 }
 0x143   : > { %720 = vmatpush1.bf16.msra.mxu0 %v1551_v0 }
 0x144   : > { %721 = vmatprep.subr.bf16.mxu0 %v1556_v2 }
 0x147   : > { %722 = vmatpush1.bf16.msra.mxu0 %v1554_v3 }
 0x148   : > { %723 = vmatprep.subr.bf16.mxu0 %v1559_v4 }
 0x14b   : > { %724 = vmatpush1.bf16.msra.mxu0 %v1557_v5 }
 0x14c   : > { %725 = vmatprep.subr.bf16.mxu0 %v1562_v6 }
 0x14f   : > { %726 = vmatpush1.bf16.msra.mxu0 %v1560_v7  ;;  %v1566_v7 = vld [vmem:[#allocation8 + $0x40] sm:$0xff]  }
 0x150   : > { %727 = vmatprep.subr.bf16.mxu0 %v1565_v8  ;;  %v1567_v8 = vld [vmem:[#allocation8] sm:$0xff]  }
 0x153   : > { %728 = vmatpush1.bf16.msra.mxu0 %v1563_v9  ;;  %v1568_v9 = vld [vmem:[#allocation8 + $0x48] sm:$0xff]  }
 0x154   : > { %1364 = vmatprep.subr.bf16.mxu0 %v1566_v7 }
 0x156   : > { %746 = vmatmul.mubr.bf16.vlgmr.msra.gmra.mrb[4].mxu0 %v310_v58 }
 0x157   : > { %1365 = vmatpush3.bf16.msra.mxu0 %v1567_v8 }
 0x158   : > { %1366 = vmatprep.subr.bf16.mxu0 %v1568_v9 }
 0x15b   : > { %1367 = vmatpush3.bf16.msra.mxu0 %v1569_v12 }
 0x209   : > { %v665_v16 = vpop.f32.mrb[0].mxu0  ;;  %v706_v17 = vpop.f32.mrb[0].mxu1 }
 0x20a   : > { %v666_v18 = vadd.f32 %v665_v16, %v364_v13  ;;  %v707_v19 = vadd.f32 %v706_v17, %v372_v14  ;;  %v667_v20 = vpop.f32.mrb[1].mxu0  ;;  %v708_v21 = vpop.f32.mrb[1].mxu1  ;;  %v1570_v13 = vld [vmem:[#allocation8 + $0x50] sm:$0xff]   ;;  %v1572_v16 = vld [vmem:[#allocation8 + $0x58] sm:$0xff]  }
 0x20b   : > { %v669_v22 = vpop.f32.mrb[2].mxu0  ;;  %v710_v23 = vpop.f32.mrb[2].mxu1  ;;  %v709_v28 = vadd.f32 %v708_v21, %v376_v25  ;;  %v668_v32 = vadd.f32 %v667_v20, %v368_v30  ;;  %v1571_v14 = vld [vmem:[#allocation8 + $0x10] sm:$0xff]   ;;  %1368 = vmatprep.subr.bf16.mxu0 %v1570_v13  ;;  %v1573_v17 = vld [vmem:[#allocation8 + $0x18] sm:$0xff]  }
 0x20c   : > { %v756_v24 = vpack.c.bf16 %v707_v19, %v707_v19  ;;  %v670_v26 = vpop.f32.mrb[3].mxu0  ;;  %v711_v27 = vpop.f32.mrb[3].mxu1  ;;  %v754_v29 = vpack.c.bf16 %v666_v18, %v666_v18  ;;  %1369 = vmatpush3.bf16.msra.mxu0 %v1571_v14  ;;  %v1574_v18 = vld [vmem:[#allocation8 + $0x60] sm:$0xff]   ;;  %v1578_v30 = vld [vmem:[#allocation8 + $0x70] sm:$0xff]  }
 0x20d   : > { %v757_v31 = vpack.c.bf16 %v709_v28, %v709_v28  ;;  %v755_v33 = vpack.c.bf16 %v668_v32, %v668_v32  ;;  %1370 = vmatprep.subr.bf16.mxu0 %v1572_v16  ;;  %v1575_v19 = vld [vmem:[#allocation8 + $0x20] sm:$0xff]   ;;  %v1576_v28 = vld [vmem:[#allocation8 + $0x68] sm:$0xff]   ;;  %v1580_v32 = vld [vmem:[#allocation8 + $0x78] sm:$0xff]  }
 0x20e   : > { %1387 = vmatpush3.bf16.xpose.msra.mxu1 %v756_v24 }
 0x20f   : > { %1392 = vmatprep.subr.bf16.mxu1 %v1793_v10 }
 0x210   : > { %1371 = vmatpush3.bf16.msra.mxu0 %v1573_v17 }
 0x211   : > { %1372 = vmatprep.subr.bf16.mxu0 %v1574_v18 }
 0x214   : > { %1373 = vmatpush3.bf16.msra.mxu0 %v1575_v19 }
 0x215   : > { %1389 = vmatmul.mubr.bf16.vlgmr.msra.gmra.mrb[4].mxu1 %v754_v29  ;;  %v1577_v29 = vld [vmem:[#allocation8 + $0x28] sm:$0xff]   ;;  %1374 = vmatprep.subr.bf16.mxu0 %v1576_v28 }
 0x216   : > { %1393 = vmatpush3.bf16.xpose.msra.mxu1 %v757_v31  ;;  %1394 = vmatprep.mubr.msk.bf16.mxu1 %vm1794_vm0, %v1793_v10  ;;  %v1579_v31 = vld [vmem:[#allocation8 + $0x30] sm:$0xff]  }
 0x217   : > { %1398 = vmatprep.subr.bf16.mxu1 %v1793_v10 }
 0x218   : > { %1375 = vmatpush3.bf16.msra.mxu0 %v1577_v29 }
 0x219   : > { %1376 = vmatprep.subr.bf16.mxu0 %v1578_v30 }
 0x21c   : > { %1377 = vmatpush3.bf16.msra.mxu0 %v1579_v31 }
 0x21d   : > { %1395 = vmatmul.mubr.bf16.vlgmr.msra.gmra.mrb[8].mxu1 %v755_v33  ;;  %v1581_v33 = vld [vmem:[#allocation8 + $0x38] sm:$0xff]   ;;  %1378 = vmatprep.subr.bf16.mxu0 %v1580_v32 }
 0x21e   : > { %1400 = vmatprep.mubr.msk.bf16.mxu1 %vm1794_vm0, %v1793_v10 }
 0x220   : > { %1379 = vmatpush3.bf16.msra.mxu0 %v1581_v33 }
 0x229   : > { %v747_v38 = vpop.f32.mrb[4].mxu0 }
 0x22a   : > { %v748_v39 = vadd.f32 %v747_v38, %v380_v36  ;;  %v749_v40 = vpop.f32.mrb[5].mxu0 }
 0x22b   : > { %v750_v41 = vadd.f32 %v749_v40, %v384_v37  ;;  %v751_v42 = vpop.f32.mrb[6].mxu0 }
 0x22c   : > { %v758_v43 = vpack.c.bf16 %v748_v39, %v748_v39  ;;  %v752_v44 = vpop.f32.mrb[7].mxu0 }
 0x22d   : > { %v759_v45 = vpack.c.bf16 %v750_v41, %v750_v41 }
 0x22e   : > { %v870_v47 = vsel %vm868_vm1, %v758_v43, 0 }
 0x22f   : > { %v916_v49 = vsel %vm868_vm1, %v759_v45, 0  ;;  %1399 = vmatpush3.bf16.msra.mxu1 %v870_v47  ;;  %v995_v45 = vrot.slane %v2035_v48, %v379_v34 }
 0x230   : > { %1404 = vmatprep.subr.bf16.mxu1 %v1793_v10 }
 0x2e8   : > { %v794_v50 = vpop.f32.mrb[4].mxu1 }
 0x2e9   : > { %v1390_v51 = vpop.f32.mrb[5].mxu1  ;;  %v841_v52 = vsel %vm840_vm2, %v794_v50, -inf }
 0x2ea   : > { %842 = vmax.xlane.f32.xlu1 %v841_v52  ;;  %v797_v53 = vpop.f32.mrb[6].mxu1 }
 0x2eb   : > { %v1391_v54 = vpop.f32.mrb[7].mxu1 }
 0x2f0   : > { %v834_v55 = vpop.f32.mrb[8].mxu1 }
 0x2f1   : > { %v1396_v56 = vpop.f32.mrb[9].mxu1  ;;  %v844_v57 = vsel %vm840_vm2, %v834_v55, -inf }
 0x2f2   : > { %845 = vmax.xlane.f32.xlu1 %v844_v57  ;;  %v837_v58 = vpop.f32.mrb[10].mxu1 }
 0x2f3   : > { %v1397_v59 = vpop.f32.mrb[11].mxu1 }
 0x377   : > { %v843_v60 = vpop.xlane.xlu1 %842 }
 0x378   : > { %v847_v61 = vsub.f32 %v794_v50, %v843_v60 }
 0x37a   : > { %v849_v62 = vmul.f32 1.442695, %v847_v61 }
 0x37c   : > { %1584 = vpow2.f32 %v849_v62  ;;  %v1150_v62 = vrot.slane %v2035_v48, %v371_v11 }
 0x37f   : > { %v846_v63 = vpop.xlane.xlu1 %845 }
 0x380   : > { %v848_v0 = vsub.f32 %v834_v55, %v846_v63 }
 0x382   : > { %v851_v2 = vmul.f32 1.442695, %v848_v0  ;;  %v1155_v0 = vrot.slane %v2035_v48, %v375_v15 }
 0x384   : > { %1586 = vpow2.f32 %v851_v2 }
 0x386   : > { %v1585_v3 = vpop.eup %1584 }
 0x387   : > { %v853_v4 = vsel %vm840_vm2, %v1585_v3, 0.0 }
 0x388   : > { %854 = vadd.xlane.f32.xlu0 %v853_v4 }
 0x38e   : > { %v1587_v5 = vpop.eup %1586 }
 0x38f   : > { %v856_v6 = vsel %vm840_vm2, %v1587_v5, 0.0 }
 0x390   : > { %857 = vadd.xlane.f32.xlu1 %v856_v6 }
 0x415   : > { %v855_v20 = vpop.xlane.xlu0 %854 }
 0x416   : > { %1588 = vrcp.f32 %v855_v20 }
 0x41d   : > { %v858_v21 = vpop.xlane.xlu1 %857 }
 0x41e   : > { %1590 = vrcp.f32 %v858_v21 }
 0x420   : > { %v1589_v22 = vpop.eup %1588 }
 0x421   : > { %v860_v23 = vmul.f32 %v1589_v22, %v1585_v3 }
 0x423   : > { %v863_v24 = vpack.c.bf16 %v860_v23, %v860_v23 }
 0x425   : > { %1401 = vmatmul.mubr.msk.bf16.vlgmr.msra.gmra.mrb[12].mxu1 %vm840_vm2, %v863_v24 }
 0x426   : > { %1405 = vmatpush3.bf16.msra.mxu1 %v916_v49  ;;  %1406 = vmatprep.mubr.msk.bf16.mxu1 %vm1794_vm0, %v1793_v10 }
 0x428   : > { %v1591_v25 = vpop.eup %1590 }
 0x429   : > { %v862_v26 = vmul.f32 %v1591_v25, %v1587_v5 }
 0x42b   : > { %v864_v27 = vpack.c.bf16 %v862_v26, %v862_v26 }
 0x42d   : > { %1407 = vmatmul.mubr.msk.bf16.vlgmr.msra.gmra.mrb[16].mxu1 %vm840_vm2, %v864_v27 }
 0x4f8   : > { %v906_v35 = vpop.f32.mrb[12].mxu1 }
 0x4f9   : > { %v1402_v36 = vpop.f32.mrb[13].mxu1  ;;  %v958_v41 = vpack.c.bf16 %v906_v35, %v906_v35 }
 0x4fa   : > { %v909_v10 = vpop.f32.mrb[14].mxu1 }
 0x4fb   : > { %v1403_v37 = vpop.f32.mrb[15].mxu1 }
 0x500   : > { %v952_v38 = vpop.f32.mrb[16].mxu1 }
 0x501   : > { %v959_v39 = vpack.c.bf16 %v952_v38, %v952_v38  ;;  %v1408_v40 = vpop.f32.mrb[17].mxu1 }
 0x502   : > { %v955_v42 = vpop.f32.mrb[18].mxu1 }
 0x503   : > { %v1409_v43 = vpop.f32.mrb[19].mxu1  ;;  %1124 = vmatprep.mubr.bf16.mxu0 %v959_v39 }
 0x504   : > { %1125 = vmatmul.mubr.bf16.vlgmr.msra.gmra.mrb[8].mxu0 %v958_v41 }
 0x5d7   : > { %v1380_v44 = vpop.f32.mrb[8].mxu0 }
 0x5d8   : > { %v1381_v47 = vpop.f32.mrb[9].mxu0 }
 0x5d9   : > { %v1382_v49 = vadd.f32 %v1381_v47, %v1380_v44  ;;  %v1383_v50 = vpop.f32.mrb[10].mxu0 }
 0x5da   : > { %v1384_v51 = vpop.f32.mrb[11].mxu0 }
 0x5db   : > { %v1127_v52 = vadd.f32 %v1382_v49, %v995_v45 }
 0x5dd   : > { %v1132_v53 = vadd.f32 %v1127_v52, %v2027_v1 }
 0x5df   : > { %1133 = vadd.xlane.f32.xlu0 %v1132_v53  ;;  %v1136_v54 = vmul.f32 %v1132_v53, %v1132_v53 }
 0x5e1   : > { %1137 = vadd.xlane.f32.xlu1 %v1136_v54 }
 0x66c   : > { %v1134_v55 = vpop.xlane.xlu0 %1133 }
 0x66d   : > { %v1135_v56 = vmul.f32 0.03125, %v1134_v55 }
 0x66e   : > { %v1138_v57 = vpop.xlane.xlu1 %1137 }
 0x66f   : > { %v1140_v58 = vmul.f32 %v1135_v56, %v1135_v56  ;;  %v1139_v59 = vmul.f32 0.03125, %v1138_v57  ;;  %v1143_v1 = vsub.f32 %v1132_v53, %v1135_v56 }
 0x671   : > { %v1141_v60 = vsub.f32 %v1139_v59, %v1140_v58 }
 0x673   : > { %v1142_v61 = vmax.f32 %v1141_v60, 0.0 }
 0x675   : > { %v1144_v34 = vadd.f32 1e-05, %v1142_v61 }
 0x677   : > { %1592 = vrsqrt.f32 %v1144_v34 }
 0x681   : > { %v1593_v63 = vpop.eup %1592 }
 0x682   : > { %v1146_v2 = vmul.f32 %v1593_v63, %v1143_v1 }
 0x684   : > { %v1151_v3 = vmul.f32 %v1150_v62, %v1146_v2 }
 0x686   : > { %v1156_v4 = vadd.f32 %v1155_v0, %v1151_v3 }
 0x688   : > { %v1157_v5 = vpack.c.bf16 %v1156_v4, %v1156_v4 }
 0x68a   : > { %1158 = vst [vmem:[%s281_s13] sm:$0xf] %v1157_v5 }
 0x68b   : > { %1721 = shalt.err (!%p1718_p13)
}
 0x68c   : > { %s1722_s28 = scalar_lea.hbm %s2092_s8, 64  ;;  %s1726_s23 = scalar_lea.hbm %s2141_s5, 128 }
 0x68d   : > { %p1723_p5 = scmp.ne.s32.totalorder %s2092_s8, %s1722_s28  ;;  %p1727_p9 = scmp.lt.u32.totalorder %s2092_s8, %s2141_s5 }
 0x68e   : > { %p1728_p12 = scmp.lt.u32.totalorder %s1726_s23, %s1722_s28  ;;  %p1730_p1 = scmp.lt.u32.totalorder %s1722_s28, %s2092_s8 }
 0x68f   : > { %p1724_p0 = pnand %p1723_p5, %p1964_p6 }
 0x690   : > { %p1729_p2 = por %p1728_p12, %p1727_p9 }
 0x691   : > { %p1725_p11 = pneg %p1724_p0 }
 0x692   : > { %p1731_p4 = por %p1730_p1, %p1729_p2 }
 0x694   : > { %p1732_p8 = pnand %p1731_p4, %p1725_p11 }
 0x696   : > { %1735 = shalt.err (!%p1732_p8)
}
 0x697   : > { %1424 = dma.vmem_to_hbm [thread:$0]  (%p1964_p6), %s2094_s30, 64, %s2092_s8, %s1160_s6  }
 0x698 PF: > { %s1185_s11 = sand.u32 1, %s1770_s18   ;;  %p2159_p3 = scmp.ne.s32.totalorder %s2146_s25, 0 }
 0x699   : > { %p2160_p7 = scmp.ge.s32.totalorder %s1782_s21, 2  ;;  %s1186_s13 = scalar_lea.sflag [#allocation4], %s1185_s11 }
 0x69b   : > { %p1441_p10 = pnand %p2160_p7, %p2159_p3 }
 0x69d   : > { %1765 = dma.done.wait (!%p1441_p10), %s1186_s13, 64  }
 0x69e   : > { %1767 = vsyncadd (!%p1441_p10), %s1186_s13, 4294967232  ;;  %p20_p13 = scmp.ge.s32.totalorder %s1950_s16, 4   ;;  %s2161_s18 = smov %s1774_s19 }
 0x69f   : > { %s2162_s19 = smov %s1778_s20  ;;  %s2163_s20 = smov %s1960_s27 }
 0x6a0   : > { %s2164_s21 = smov %s1950_s16  ;;  %22 = sbr.rel (!%p20_p13) target bundleno = 7 (0x7), region = 97 }
 0x6a7   :  { %1191 = vsyncpa [#allocation3], 1 }
 0x6a8   :  { %1193 = vsyncpa [#allocation3 + $0x1], 1 }
 0x6a9   :  { %1194 = vsyncpa [#allocation6], 1 }
 0x6aa   :  { %1195 = vsyncpa [#allocation9], 1 }
 0x6ab   :  { %1196 = vsyncpa [#allocation4], 1 }
 0x6ac   :  { %1198 = vsyncpa [#allocation4 + $0x1], 1 }

</bundles_post_ra>
